<compile_context>
chip_gen: v7x
topology: tpu7x:2x2x1
jax: 0.10.0
libtpu: 0.0.40
codegen_flags: <defaults>
</compile_context>

<pallas_src>
import jax
import jax.numpy as jnp
from jax.experimental import pallas as pl
from jax.experimental.pallas import tpu as pltpu

LANE = 128
SUB = 8


def gnn_kernel(x_ref, a_ref, p_ref,
               wf_ref, bf_ref,
               w2_ref, b2_ref,
               out_ref):
    a = a_ref[...]                                   # (N, N) bf16, cast once

    # fused (projection + GCNConv-1 feature transform): H = X @ (Wp @ W1)
    h = jnp.dot(x_ref[...], wf_ref[...], preferred_element_type=jnp.float32)
    # GCNConv-1 aggregation + bias + ReLU (bf16 MXU feed, f32 accumulate/VPU)
    h = jnp.dot(a, h.astype(jnp.bfloat16),
                preferred_element_type=jnp.float32) + bf_ref[...]
    h = jnp.maximum(h, 0.0)

    # GCNConv-2
    h = jnp.dot(h, w2_ref[...], preferred_element_type=jnp.float32)
    h = jnp.dot(a, h.astype(jnp.bfloat16),
                preferred_element_type=jnp.float32) + b2_ref[...]
    h = jnp.maximum(h, 0.0)

    # global_mean_pool as matmul with the (G, N) pooling matrix (f32)
    out_ref[...] = jnp.dot(p_ref[...], h, preferred_element_type=jnp.float32)


# ---------- wrapper: fusion, lane padding, pallas_call ----------

def _round_up(v, m):
    return ((v + m - 1) // m) * m


def _pad2(arr, rows, cols):
    return jnp.pad(arr, ((0, rows - arr.shape[0]), (0, cols - arr.shape[1])))


def gnn_forward(x, a_norm, pool, wp, bp, w1, b1, w2, b2):
    n, f_in = x.shape
    g = pool.shape[0]
    h1 = w1.shape[1]
    h2 = w2.shape[1]

    # Fold projection Linear into the first GCN weight (exact).
    w_fused = wp @ w1                    # (F_IN, H1)
    b_fused = bp @ w1 + b1               # (1, H1)

    # Lane/sublane padding.  N is the lane (last) dim of A, so pad it to 128
    # too; padded node rows carry garbage after the bias/ReLU but the pooling
    # matrix has zero columns there, so the result is exact.
    n_pad = _round_up(n, LANE)
    g_pad = _round_up(g, SUB)
    f_pad = _round_up(f_in, LANE)
    h1_pad = _round_up(h1, LANE)
    h2_pad = _round_up(h2, LANE)

    x_p = _pad2(x, n_pad, f_pad)
    a_p = _pad2(a_norm, n_pad, n_pad).astype(jnp.bfloat16)   # O(N^2) operand in bf16
    p_p = _pad2(pool, g_pad, n_pad)
    wf_p = _pad2(w_fused, f_pad, h1_pad)
    bf_p = _pad2(b_fused, 1, h1_pad)
    w2_p = _pad2(w2, h1_pad, h2_pad)
    b2_p = _pad2(b2, 1, h2_pad)

    args = (x_p, a_p, p_p, wf_p, bf_p, w2_p, b2_p)

    # Explicit VMEM budget from actual buffer sizes (cap at v7x's 64 MiB).
    out_bytes = g_pad * h2_pad * 4
    needed = sum(int(a.size) * a.dtype.itemsize for a in args) + out_bytes
    vmem_limit = int(min(64 << 20, max(2 * needed + (1 << 20), 4 << 20)))

    vmem = pl.BlockSpec(memory_space=pltpu.MemorySpace.VMEM)
    out_p = pl.pallas_call(
        gnn_kernel,
        out_shape=jax.ShapeDtypeStruct((g_pad, h2_pad), jnp.float32),
        in_specs=[vmem] * len(args),
        out_specs=vmem,
        compiler_params=pltpu.CompilerParams(vmem_limit_bytes=vmem_limit),
    )(*args)
    return out_p[:g, :h2]


# ---------- plain-JAX glue: graph preprocessing + parameter init ----------

def build_gcn_adj(edge_index, edge_weight, num_nodes):
    """Dense GCN-normalized adjacency: D^{-1/2} (A + I) D^{-1/2}.

    Self-loops are only added where missing (matching add_remaining_self_loops)."""
    src, dst = edge_index[0], edge_index[1]
    a = jnp.zeros((num_nodes, num_nodes), jnp.float32)
    a = a.at[dst, src].add(edge_weight)               # message src -> dst
    diag = jnp.diagonal(a)
    a = a + jnp.diag(jnp.where(diag == 0, 1.0, 0.0))  # add remaining self loops
    deg = a.sum(axis=1)
    dinv = jnp.where(deg > 0, 1.0 / jnp.sqrt(deg), 0.0)
    return dinv[:, None] * a * dinv[None, :]


def build_mean_pool(batch, num_graphs):
    onehot = (batch[None, :] == jnp.arange(num_graphs)[:, None]).astype(jnp.float32)
    counts = jnp.maximum(onehot.sum(axis=1, keepdims=True), 1.0)
    return onehot / counts


def init_linear(key, fan_in, fan_out):
    kw, kb = jax.random.split(key)
    scale = 1.0 / jnp.sqrt(jnp.float32(fan_in))
    w = jax.random.uniform(kw, (fan_in, fan_out), jnp.float32, -scale, scale)
    b = jax.random.uniform(kb, (1, fan_out), jnp.float32, -scale, scale)
    return w, b


if __name__ == "__main__":
    # Small, module-consistent shapes:
    #   16 nodes, input_size=8, projection_size=16, hidden_sizes=[32, 32], 2 graphs
    N, F_IN, PROJ, H1, H2, G = 16, 8, 16, 32, 32, 2

    key = jax.random.PRNGKey(0)
    kx, kp, k1, k2, kw = jax.random.split(key, 5)

    x = jax.random.normal(kx, (N, F_IN), jnp.float32)

    # Two ring graphs of 8 nodes each (bidirectional edges), batch = graph id.
    batch = jnp.array([0] * 8 + [1] * 8, jnp.int32)
    srcs, dsts = [], []
    for g in range(G):
        base = g * 8
        for i in range(8):
            a_n, b_n = base + i, base + (i + 1) % 8
            srcs += [a_n, b_n]
            dsts += [b_n, a_n]
    edge_index = jnp.array([srcs, dsts], jnp.int32)
    edge_weight = jax.random.uniform(kw, (edge_index.shape[1],), jnp.float32, 0.5, 1.5)

    a_norm = build_gcn_adj(edge_index, edge_weight, N)
    pool = build_mean_pool(batch, G)

    # Deterministic parameter init (projection Linear + two GCNConv layers).
    wp, bp = init_linear(kp, F_IN, PROJ)
    w1, b1 = init_linear(k1, PROJ, H1)
    w2, b2 = init_linear(k2, H1, H2)

    out = gnn_forward(x, a_norm, pool, wp, bp, w1, b1, w2, b2)
    out = jax.block_until_ready(out)

    # Pure-JAX f32 reference (unfused, unpadded) for semantic sanity.
    h_ref = x @ wp + bp
    h_ref = jnp.maximum(a_norm @ (h_ref @ w1) + b1, 0.0)
    h_ref = jnp.maximum(a_norm @ (h_ref @ w2) + b2, 0.0)
    ref = pool @ h_ref

    assert out.shape == (G, H2)
    # bf16 is used only for the A@H MXU feeds (f32 accumulation), so allow a
    # modest tolerance vs. the pure-f32 reference.
    assert jnp.allclose(out, ref, atol=2e-2, rtol=2e-2)
    print("KERNEL_OK")
</pallas_src>

<mosaic_0001>
module attributes {stable_mosaic.version = 11 : i64} {
  func.func @gnn_kernel(%arg0: memref<128x128xf32, #tpu.memory_space<vmem>>, %arg1: memref<128x128xbf16, #tpu.memory_space<vmem>>, %arg2: memref<8x128xf32, #tpu.memory_space<vmem>>, %arg3: memref<128x128xf32, #tpu.memory_space<vmem>>, %arg4: memref<1x128xf32, #tpu.memory_space<vmem>>, %arg5: memref<128x128xf32, #tpu.memory_space<vmem>>, %arg6: memref<1x128xf32, #tpu.memory_space<vmem>>, %arg7: memref<8x128xf32, #tpu.memory_space<vmem>>) attributes {dimension_semantics = [], scalar_prefetch = 0 : i64, scratch_operands = 0 : i64, tpu.core_type = #tpu.core_type<tc>} {
    %c0 = arith.constant 0 : index
    %c0_0 = arith.constant 0 : index
    %0 = vector.load %arg1[%c0, %c0_0] : memref<128x128xbf16, #tpu.memory_space<vmem>>, vector<128x128xbf16>
    %c0_1 = arith.constant 0 : index
    %c0_2 = arith.constant 0 : index
    %1 = vector.load %arg0[%c0_1, %c0_2] : memref<128x128xf32, #tpu.memory_space<vmem>>, vector<128x128xf32>
    %c0_3 = arith.constant 0 : index
    %c0_4 = arith.constant 0 : index
    %2 = vector.load %arg3[%c0_3, %c0_4] : memref<128x128xf32, #tpu.memory_space<vmem>>, vector<128x128xf32>
    %cst = arith.constant dense<0.000000e+00> : vector<128x128xf32>
    %3 = tpu.matmul %1, %2, %cst {dimension_numbers = #tpu.dot_dimension_numbers<[1], [0], [0], [1], [0, 0, 1, 1], [], []>} : vector<128x128xf32>, vector<128x128xf32>, vector<128x128xf32> -> vector<128x128xf32>
    %4 = arith.truncf %3 : vector<128x128xf32> to vector<128x128xbf16>
    %cst_5 = arith.constant dense<0.000000e+00> : vector<128x128xf32>
    %5 = tpu.matmul %0, %4, %cst_5 {dimension_numbers = #tpu.dot_dimension_numbers<[1], [0], [0], [1], [0, 0, 1, 1], [], []>} : vector<128x128xbf16>, vector<128x128xbf16>, vector<128x128xf32> -> vector<128x128xf32>
    %c0_6 = arith.constant 0 : index
    %c0_7 = arith.constant 0 : index
    %6 = vector.load %arg4[%c0_6, %c0_7] : memref<1x128xf32, #tpu.memory_space<vmem>>, vector<1x128xf32>
    %7 = vector.broadcast %6 : vector<1x128xf32> to vector<128x128xf32>
    %8 = arith.addf %5, %7 : vector<128x128xf32>
    %cst_8 = arith.constant 0.000000e+00 : f32
    %9 = vector.broadcast %cst_8 : f32 to vector<128x128xf32>
    %10 = arith.maximumf %8, %9 : vector<128x128xf32>
    %c0_9 = arith.constant 0 : index
    %c0_10 = arith.constant 0 : index
    %11 = vector.load %arg5[%c0_9, %c0_10] : memref<128x128xf32, #tpu.memory_space<vmem>>, vector<128x128xf32>
    %cst_11 = arith.constant dense<0.000000e+00> : vector<128x128xf32>
    %12 = tpu.matmul %10, %11, %cst_11 {dimension_numbers = #tpu.dot_dimension_numbers<[1], [0], [0], [1], [0, 0, 1, 1], [], []>} : vector<128x128xf32>, vector<128x128xf32>, vector<128x128xf32> -> vector<128x128xf32>
    %13 = arith.truncf %12 : vector<128x128xf32> to vector<128x128xbf16>
    %cst_12 = arith.constant dense<0.000000e+00> : vector<128x128xf32>
    %14 = tpu.matmul %0, %13, %cst_12 {dimension_numbers = #tpu.dot_dimension_numbers<[1], [0], [0], [1], [0, 0, 1, 1], [], []>} : vector<128x128xbf16>, vector<128x128xbf16>, vector<128x128xf32> -> vector<128x128xf32>
    %c0_13 = arith.constant 0 : index
    %c0_14 = arith.constant 0 : index
    %15 = vector.load %arg6[%c0_13, %c0_14] : memref<1x128xf32, #tpu.memory_space<vmem>>, vector<1x128xf32>
    %16 = vector.broadcast %15 : vector<1x128xf32> to vector<128x128xf32>
    %17 = arith.addf %14, %16 : vector<128x128xf32>
    %cst_15 = arith.constant 0.000000e+00 : f32
    %18 = vector.broadcast %cst_15 : f32 to vector<128x128xf32>
    %19 = arith.maximumf %17, %18 : vector<128x128xf32>
    %c0_16 = arith.constant 0 : index
    %c0_17 = arith.constant 0 : index
    %20 = vector.load %arg2[%c0_16, %c0_17] : memref<8x128xf32, #tpu.memory_space<vmem>>, vector<8x128xf32>
    %cst_18 = arith.constant dense<0.000000e+00> : vector<8x128xf32>
    %21 = tpu.matmul %20, %19, %cst_18 {dimension_numbers = #tpu.dot_dimension_numbers<[1], [0], [0], [1], [0, 0, 1, 1], [], []>} : vector<8x128xf32>, vector<128x128xf32>, vector<8x128xf32> -> vector<8x128xf32>
    %c0_19 = arith.constant 0 : index
    %c0_20 = arith.constant 0 : index
    %22 = vector.load %arg7[%c0_19, %c0_20] : memref<8x128xf32, #tpu.memory_space<vmem>>, vector<8x128xf32>
    tpu.vector_store %arg7[%c0_19, %c0_20], %21 {strides = array<i32>} : memref<8x128xf32, #tpu.memory_space<vmem>>, vector<8x128xf32>,
    return
  }
}

</mosaic_0001>

<bundles_post_ra>
// kernel: tpu_custom_call.1
= control target key start
LH: loop header
LB: loop body
LE: loop exit
PB: predicated region body
PF: predicated region fallthrough
CT: control target
= control target key end

     0   :  { %12 = vsyncpa [#allocation3], 0  ;;  %s1604_s0 = inlined_call_operand.hbm [shape: f32[128,128], index: 0, kind: input, shape index: {}]   ;;  %s1605_s1 = inlined_call_operand.hbm [shape: bf16[128,128], index: 1, kind: input, shape index: {}]   ;;  %s1606_s2 = inlined_call_operand.hbm [shape: f32[8,128], index: 2, kind: input, shape index: {}]   ;;  %s1607_s3 = inlined_call_operand.hbm [shape: f32[128,128], index: 3, kind: input, shape index: {}]   ;;  %s1608_s4 = inlined_call_operand.vmem [shape: f32[1,128], index: 4, kind: input, shape index: {}]   ;;  %s1609_s5 = inlined_call_operand.hbm [shape: f32[128,128], index: 5, kind: input, shape index: {}]   ;;  %s1610_s6 = inlined_call_operand.vmem [shape: f32[1,128], index: 6, kind: input, shape index: {}]   ;;  %s1611_s7 = inlined_call_operand.hbm [shape: f32[8,128], index: 7, kind: output, shape index: {}]  }
   0x1   :  { %13 = vsyncpa [#allocation6], 0 }
   0x2   :  { %14 = vsyncpa [#allocation9], 0 }
   0x3   :  { %15 = vsyncpa [#allocation4], 0  ;;  %s1424_s24 = smov [#allocation5]   ;;  %s1284_s28 = scalar_lea.hbm %s1605_s1, 1024 }
   0x4   :  { %s33_s25 = sshll.u32 %s1424_s24, 4  ;;  %p1285_p0 = scmp.ne.s32.totalorder %s1605_s1, %s1284_s28  ;;  %s34_s25 = int_to_ptr.vmem [resolvable:$true] %s33_s25 }
   0x5   :  { %p1288_p1 = scmp.lt.u32.totalorder %s1284_s28, %s1605_s1 }
   0x7   :  { %p1290_p2 = pnand %p1288_p1, %p1285_p0 }
   0x9   :  { %1293 = shalt.err (!%p1290_p2)
}
   0xa   :  { %s1294_s10 = scalar_lea.vmem %s34_s25, 1024  ;;  %p1299_p4 = scmp.lt.s32.totalorder %s34_s25, %s34_s25 }
   0xb   :  { %p1295_p3 = scmp.ne.s32.totalorder %s34_s25, %s1294_s10  ;;  %p1300_p5 = scmp.lt.s32.totalorder %s1294_s10, %s1294_s10 }
   0xd   :  { %p1301_p6 = por %p1300_p5, %p1299_p4 }
   0xf   :  { %p1302_p7 = pnand %p1301_p6, %p1295_p3 }
  0x11   :  { %1305 = shalt.err (!%p1302_p7)
}
  0x12   :  { %s1425_s11 = smov 64   ;;  %s1426_s12 = smov 4  }
  0x13   :  { %39 = dma.hbm_to_vmem [thread:$0]  %s1605_s1, 1024, %s34_s25, [#allocation6], %s1425_s11, %s1425_s11, %s1426_s12  }
  0x14   :  { %s1427_s15 = smov [#allocation8]   ;;  %s1428_s17 = smov [#allocation2]  }
  0x15   :  { %s55_s16 = sshll.u32 %s1427_s15, 4  ;;  %s21_s18 = sshll.u32 %s1428_s17, 4  ;;  %s56_s16 = int_to_ptr.vmem [resolvable:$true] %s55_s16  ;;  %s22_s18 = int_to_ptr.vmem [resolvable:$true] %s21_s18 }
  0x16   :  { %s1306_s21 = scalar_lea.hbm %s1607_s3, 2048 }
  0x17   :  { %p1307_p8 = scmp.ne.s32.totalorder %s1607_s3, %s1306_s21  ;;  %p1310_p9 = scmp.lt.u32.totalorder %s1306_s21, %s1607_s3 }
  0x19   :  { %p1312_p10 = pnand %p1310_p9, %p1307_p8 }
  0x1b   :  { %1315 = shalt.err (!%p1312_p10)
}
  0x1c   :  { %s1316_s1 = scalar_lea.vmem %s56_s16, 2048  ;;  %p1321_p12 = scmp.lt.s32.totalorder %s56_s16, %s56_s16 }
  0x1d   :  { %p1317_p11 = scmp.ne.s32.totalorder %s56_s16, %s1316_s1  ;;  %p1322_p13 = scmp.lt.s32.totalorder %s1316_s1, %s1316_s1 }
  0x1f   :  { %p1323_p0 = por %p1322_p13, %p1321_p12 }
  0x21   :  { %p1324_p1 = pnand %p1323_p0, %p1317_p11 }
  0x23   :  { %1327 = shalt.err (!%p1324_p1)
}
  0x24   :  { %s1429_s25 = smov 128   ;;  %s1430_s27 = smov 8  }
  0x25   :  { %61 = dma.hbm_to_vmem [thread:$0]  %s1607_s3, 2048, %s56_s16, [#allocation9], %s1429_s25, %s1429_s25, %s1430_s27  }
  0x26   :  { %s1328_s9 = scalar_lea.hbm %s1604_s0, 2048 }
  0x27   :  { %p1329_p2 = scmp.ne.s32.totalorder %s1604_s0, %s1328_s9  ;;  %p1332_p3 = scmp.lt.u32.totalorder %s1328_s9, %s1604_s0 }
  0x29   :  { %p1334_p4 = pnand %p1332_p3, %p1329_p2 }
  0x2b   :  { %1337 = shalt.err (!%p1334_p4)
}
  0x2c   :  { %s1338_s14 = scalar_lea.vmem %s22_s18, 2048  ;;  %p1343_p6 = scmp.lt.s32.totalorder %s22_s18, %s22_s18 }
  0x2d   :  { %p1339_p5 = scmp.ne.s32.totalorder %s22_s18, %s1338_s14  ;;  %p1344_p7 = scmp.lt.s32.totalorder %s1338_s14, %s1338_s14 }
  0x2f   :  { %p1345_p8 = por %p1344_p7, %p1343_p6 }
  0x31   :  { %p1346_p9 = pnand %p1345_p8, %p1339_p5 }
  0x33   :  { %1349 = shalt.err (!%p1346_p9)
}
  0x34   :  { %27 = dma.hbm_to_vmem [thread:$0]  %s1604_s0, 2048, %s22_s18, [#allocation3], %s1429_s25, %s1429_s25, %s1430_s27  }
  0x35   :  { %s1431_s16 = smov [#allocation7]   ;;  %s1432_s19 = smov [#allocation10]  }
  0x36   :  { %s46_s17 = sshll.u32 %s1431_s16, 4  ;;  %s69_s20 = sshll.u32 %s1432_s19, 4  ;;  %s47_s17 = int_to_ptr.vmem [resolvable:$true] %s46_s17  ;;  %s70_s20 = int_to_ptr.vmem [resolvable:$true] %s69_s20 }
  0x37   :  { %s1350_s23 = scalar_lea.hbm %s1606_s2, 128 }
  0x38   :  { %p1351_p10 = scmp.ne.s32.totalorder %s1606_s2, %s1350_s23  ;;  %p1354_p11 = scmp.lt.u32.totalorder %s1350_s23, %s1606_s2 }
  0x3a   :  { %p1356_p12 = pnand %p1354_p11, %p1351_p10 }
  0x3c   :  { %1359 = shalt.err (!%p1356_p12)
}
  0x3d   :  { %s1360_s0 = scalar_lea.vmem %s47_s17, 128  ;;  %p1365_p0 = scmp.lt.s32.totalorder %s47_s17, %s47_s17 }
  0x3e   :  { %p1361_p13 = scmp.ne.s32.totalorder %s47_s17, %s1360_s0  ;;  %p1366_p1 = scmp.lt.s32.totalorder %s1360_s0, %s1360_s0 }
  0x40   :  { %p1367_p2 = por %p1366_p1, %p1365_p0 }
  0x42   :  { %p1368_p3 = pnand %p1367_p2, %p1361_p13 }
  0x44   :  { %1371 = shalt.err (!%p1368_p3)
}
  0x45   :  { %49 = dma.hbm_to_vmem [thread:$0]  %s1606_s2, 128, %s47_s17, [#allocation6]  }
  0x46   :  { %s1372_s9 = scalar_lea.hbm %s1609_s5, 2048 }
  0x47   :  { %p1373_p4 = scmp.ne.s32.totalorder %s1609_s5, %s1372_s9  ;;  %p1376_p5 = scmp.lt.u32.totalorder %s1372_s9, %s1609_s5 }
  0x49   :  { %p1378_p6 = pnand %p1376_p5, %p1373_p4 }
  0x4b   :  { %1381 = shalt.err (!%p1378_p6)
}
  0x4c   :  { %s1382_s14 = scalar_lea.vmem %s70_s20, 2048  ;;  %p1387_p8 = scmp.lt.s32.totalorder %s70_s20, %s70_s20 }
  0x4d   :  { %p1383_p7 = scmp.ne.s32.totalorder %s70_s20, %s1382_s14  ;;  %p1388_p9 = scmp.lt.s32.totalorder %s1382_s14, %s1382_s14 }
  0x4f   :  { %p1389_p10 = por %p1388_p9, %p1387_p8 }
  0x51   :  { %p1390_p11 = pnand %p1389_p10, %p1383_p7 }
  0x53   :  { %1393 = shalt.err (!%p1390_p11)
}
  0x54   :  { %75 = dma.hbm_to_vmem [thread:$0]  %s1609_s5, 2048, %s70_s20, [#allocation9], %s1429_s25, %s1429_s25, %s1430_s27  }
  0x55   :  { %1416 = dma.done.wait [#allocation3], 2048  }
  0x56   :  { %1417 = vsyncadd [#allocation3], 4294965248 }
  0x57   :  { %1418 = dma.done.wait [#allocation6], 1152  }
  0x58   :  { %1419 = vsyncadd [#allocation6], 4294966144 }
  0x59   :  { %1420 = dma.done.wait [#allocation9], 4096  }
  0x5a   :  { %1421 = vsyncadd [#allocation9], 4294963200  ;;  %v126_v0 = vld [vmem:[#allocation8] sm:$0xff]  ;;  %v127_v1 = vld [vmem:[#allocation8 + $0x8] sm:$0xff]  ;;  %vm1434_vm0 = vmmov 0  }
  0x5b   :  { %v128_v2 = vld [vmem:[#allocation8 + $0x10] sm:$0xff]  ;;  %v1175_v3 = vpack.c.bf16 %v127_v1, %v126_v0  ;;  %v129_v4 = vld [vmem:[#allocation8 + $0x18] sm:$0xff]  ;;  %v130_v6 = vld [vmem:[#allocation8 + $0x20] sm:$0xff] }
  0x5c   :  { %v1179_v5 = vpack.c.bf16 %v129_v4, %v128_v2  ;;  %v131_v7 = vld [vmem:[#allocation8 + $0x28] sm:$0xff]  ;;  %v110_v9 = vld [vmem:[#allocation2] sm:$0xff]  ;;  %v132_v10 = vld [vmem:[#allocation8 + $0x30] sm:$0xff] }
  0x5d   :  { %1176 = vmatprep.subr.bf16.mxu0 %v1175_v3  ;;  %v1183_v8 = vpack.c.bf16 %v131_v7, %v130_v6  ;;  %v133_v11 = vld [vmem:[#allocation8 + $0x38] sm:$0xff]  ;;  %996 = vmatprep.mubr.f32.mxu0 %v110_v9  ;;  %v134_v13 = vld [vmem:[#allocation8 + $0x40] sm:$0xff]  ;;  %v135_v14 = vld [vmem:[#allocation8 + $0x48] sm:$0xff] }
  0x5e   :  { %1178 = vmatpush3.bf16.msra.mxu0 %v1175_v3  ;;  %v1187_v12 = vpack.c.bf16 %v133_v11, %v132_v10  ;;  %v136_v15 = vld [vmem:[#allocation8 + $0x50] sm:$0xff]  ;;  %v137_v16 = vld [vmem:[#allocation8 + $0x58] sm:$0xff]  ;;  %v1191_v17 = vpack.c.bf16 %v135_v14, %v134_v13  ;;  %v138_v19 = vld [vmem:[#allocation8 + $0x60] sm:$0xff] }
  0x5f   :  { %1180 = vmatprep.subr.bf16.mxu0 %v1179_v5  ;;  %v1195_v18 = vpack.c.bf16 %v137_v16, %v136_v15  ;;  %v139_v20 = vld [vmem:[#allocation8 + $0x68] sm:$0xff]  ;;  %v140_v22 = vld [vmem:[#allocation8 + $0x70] sm:$0xff]  ;;  %v141_v23 = vld [vmem:[#allocation8 + $0x78] sm:$0xff] }
  0x60   :  { %v1199_v21 = vpack.c.bf16 %v139_v20, %v138_v19  ;;  %v1203_v24 = vpack.c.bf16 %v141_v23, %v140_v22  ;;  %v111_v25 = vld [vmem:[#allocation2 + $0x8] sm:$0xff]  ;;  %v112_v26 = vld [vmem:[#allocation2 + $0x10] sm:$0xff]  ;;  %v113_v27 = vld [vmem:[#allocation2 + $0x18] sm:$0xff] }
  0x61   :  { %v114_v28 = vld [vmem:[#allocation2 + $0x20] sm:$0xff]  ;;  %v115_v29 = vld [vmem:[#allocation2 + $0x28] sm:$0xff]  ;;  %v116_v30 = vld [vmem:[#allocation2 + $0x30] sm:$0xff] }
  0x62   :  { %1182 = vmatpush3.bf16.msra.mxu0 %v1179_v5  ;;  %v117_v31 = vld [vmem:[#allocation2 + $0x38] sm:$0xff]  ;;  %v118_v32 = vld [vmem:[#allocation2 + $0x40] sm:$0xff]  ;;  %v119_v33 = vld [vmem:[#allocation2 + $0x48] sm:$0xff] }
  0x63   :  { %1184 = vmatprep.subr.bf16.mxu0 %v1183_v8  ;;  %v120_v34 = vld [vmem:[#allocation2 + $0x50] sm:$0xff]  ;;  %v121_v35 = vld [vmem:[#allocation2 + $0x58] sm:$0xff]  ;;  %v122_v36 = vld [vmem:[#allocation2 + $0x60] sm:$0xff] }
  0x64   :  { %v123_v37 = vld [vmem:[#allocation2 + $0x68] sm:$0xff]  ;;  %v124_v38 = vld [vmem:[#allocation2 + $0x70] sm:$0xff]  ;;  %v125_v39 = vld [vmem:[#allocation2 + $0x78] sm:$0xff] }
  0x65   :  { %v1546_v40 = vld [vmem:[#allocation5] sm:$0xff]   ;;  %v463_v41 = vld [vmem:[#allocation10] sm:$0xff]  ;;  %v464_v42 = vld [vmem:[#allocation10 + $0x8] sm:$0xff] }
  0x66   :  { %1186 = vmatpush3.bf16.msra.mxu0 %v1183_v8  ;;  %1036 = vmatprep.mubr.bf16.mxu1 %v1546_v40  ;;  %v465_v43 = vld [vmem:[#allocation10 + $0x10] sm:$0xff]  ;;  %v1207_v44 = vpack.c.bf16 %v464_v42, %v463_v41  ;;  %v466_v45 = vld [vmem:[#allocation10 + $0x18] sm:$0xff]  ;;  %v467_v47 = vld [vmem:[#allocation10 + $0x20] sm:$0xff] }
  0x67   :  { %1188 = vmatprep.subr.bf16.mxu0 %v1187_v12  ;;  %v1211_v46 = vpack.c.bf16 %v466_v45, %v465_v43  ;;  %v468_v48 = vld [vmem:[#allocation10 + $0x28] sm:$0xff]  ;;  %v469_v50 = vld [vmem:[#allocation10 + $0x30] sm:$0xff]  ;;  %v470_v51 = vld [vmem:[#allocation10 + $0x38] sm:$0xff] }
  0x68   :  { %v1215_v49 = vpack.c.bf16 %v468_v48, %v467_v47  ;;  %v1219_v52 = vpack.c.bf16 %v470_v51, %v469_v50  ;;  %v471_v53 = vld [vmem:[#allocation10 + $0x40] sm:$0xff]  ;;  %v472_v54 = vld [vmem:[#allocation10 + $0x48] sm:$0xff]  ;;  %v473_v56 = vld [vmem:[#allocation10 + $0x50] sm:$0xff] }
  0x69   :  { %v1223_v55 = vpack.c.bf16 %v472_v54, %v471_v53  ;;  %v474_v57 = vld [vmem:[#allocation10 + $0x58] sm:$0xff]  ;;  %v1549_v19 = vld [vmem:[#allocation5 + $0x8] sm:$0xff]   ;;  %v1551_v20 = vld [vmem:[#allocation5 + $0x10] sm:$0xff]  }
  0x6a   :  { %1190 = vmatpush3.bf16.msra.mxu0 %v1187_v12  ;;  %v1227_v58 = vpack.c.bf16 %v474_v57, %v473_v56  ;;  %v1557_v22 = vld [vmem:[#allocation5 + $0x20] sm:$0xff]   ;;  %v1561_v23 = vld [vmem:[#allocation5 + $0x28] sm:$0xff]  }
  0x6b   :  { %1192 = vmatprep.subr.bf16.mxu0 %v1191_v17 }
  0x6e   :  { %1194 = vmatpush3.bf16.msra.mxu0 %v1191_v17 }
  0x6f   :  { %1196 = vmatprep.subr.bf16.mxu0 %v1195_v18 }
  0x72   :  { %1198 = vmatpush3.bf16.msra.mxu0 %v1195_v18 }
  0x73   :  { %1200 = vmatprep.subr.bf16.mxu0 %v1199_v21 }
  0x76   :  { %1202 = vmatpush3.bf16.msra.mxu0 %v1199_v21  ;;  %v1555_v21 = vld [vmem:[#allocation5 + $0x18] sm:$0xff]  }
  0x77   :  { %1204 = vmatprep.subr.bf16.mxu0 %v1203_v24 }
  0x7a   :  { %1206 = vmatpush3.bf16.msra.mxu0 %v1203_v24  ;;  %v1563_v24 = vld [vmem:[#allocation5 + $0x30] sm:$0xff]  }
  0x7b   :  { %1208 = vmatprep.subr.bf16.mxu0 %v1207_v44 }
  0x7d   :  { %997 = vmatmul.mubr.f32.vlgmr.msra.gmra.mrb[0].mxu0 %v111_v25  ;;  %v1567_v25 = vld [vmem:[#allocation5 + $0x38] sm:$0xff]  }
  0x7e   :  { %999 = vmatprep.mubr.f32.mxu0 %v112_v26  ;;  %1210 = vmatpush3.bf16.msra.mxu0 %v1207_v44  ;;  %v475_v26 = vld [vmem:[#allocation10 + $0x60] sm:$0xff] }
  0x7f   :  { %1212 = vmatprep.subr.bf16.mxu0 %v1211_v46 }
  0x81   :  { %1000 = vmatmul.mubr.f32.gmra.mrb[2].mxu0 %v113_v27  ;;  %v476_v27 = vld [vmem:[#allocation10 + $0x68] sm:$0xff] }
  0x82   :  { %1002 = vmatprep.mubr.f32.mxu0 %v114_v28  ;;  %1214 = vmatpush3.bf16.msra.mxu0 %v1211_v46  ;;  %v1231_v28 = vpack.c.bf16 %v476_v27, %v475_v26 }
  0x83   :  { %1216 = vmatprep.subr.bf16.mxu0 %v1215_v49 }
  0x85   :  { %1003 = vmatmul.mubr.f32.gmra.mrb[4].mxu0 %v115_v29  ;;  %v477_v29 = vld [vmem:[#allocation10 + $0x70] sm:$0xff] }
  0x86   :  { %1005 = vmatprep.mubr.f32.mxu0 %v116_v30  ;;  %1218 = vmatpush3.bf16.msra.mxu0 %v1215_v49  ;;  %v478_v30 = vld [vmem:[#allocation10 + $0x78] sm:$0xff] }
  0x87   :  { %1220 = vmatprep.subr.bf16.mxu0 %v1219_v52 }
  0x89   :  { %1006 = vmatmul.mubr.f32.gmra.mrb[6].mxu0 %v117_v31  ;;  %v1235_v31 = vpack.c.bf16 %v478_v30, %v477_v29 }
  0x8a   :  { %1008 = vmatprep.mubr.f32.mxu0 %v118_v32  ;;  %1222 = vmatpush3.bf16.msra.mxu0 %v1219_v52  ;;  %v841_v32 = vld [vmem:[%s1608_s4] ss:$0 sm:$0xff] }
  0x8b   :  { %1224 = vmatprep.subr.bf16.mxu0 %v1223_v55 }
  0x8d   :  { %1009 = vmatmul.mubr.f32.gmra.mrb[8].mxu0 %v119_v33 }
  0x8e   :  { %1011 = vmatprep.mubr.f32.mxu0 %v120_v34  ;;  %1226 = vmatpush3.bf16.msra.mxu0 %v1223_v55 }
  0x8f   :  { %1228 = vmatprep.subr.bf16.mxu0 %v1227_v58 }
  0x91   :  { %1012 = vmatmul.mubr.f32.gmra.mrb[10].mxu0 %v121_v35 }
  0x92   :  { %1014 = vmatprep.mubr.f32.mxu0 %v122_v36  ;;  %1230 = vmatpush3.bf16.msra.mxu0 %v1227_v58 }
  0x93   :  { %1232 = vmatprep.subr.bf16.mxu0 %v1231_v28 }
  0x95   :  { %1015 = vmatmul.mubr.f32.gmra.mrb[12].mxu0 %v123_v37 }
  0x96   :  { %1017 = vmatprep.mubr.f32.mxu0 %v124_v38  ;;  %1234 = vmatpush3.bf16.msra.mxu0 %v1231_v28 }
  0x97   :  { %1236 = vmatprep.subr.bf16.mxu0 %v1235_v31 }
  0x99   :  { %1018 = vmatmul.mubr.f32.gmra.mrb[14].mxu0 %v125_v39 }
  0x9a   :  { %1238 = vmatpush3.bf16.msra.mxu0 %v1235_v31 }
 0x150   :  { %v998_v59 = vpop.f32.mrb[0].mxu0 }
 0x151   :  { %v208_v60 = vpop.f32.mrb[1].mxu0 }
 0x152   :  { %v287_v61 = vpack.c.bf16 %v998_v59, %v208_v60 }
 0x154   :  { %v1001_v62 = vpop.f32.mrb[2].mxu0  ;;  %1020 = vmatprep.subr.bf16.mxu1 %v287_v61 }
 0x155   :  { %v218_v63 = vpop.f32.mrb[3].mxu0  ;;  %1021 = vmatpush3.bf16.msra.mxu1 %v287_v61 }
 0x156   :  { %v288_v0 = vpack.c.bf16 %v1001_v62, %v218_v63 }
 0x158   :  { %v1004_v1 = vpop.f32.mrb[4].mxu0  ;;  %1022 = vmatprep.subr.bf16.mxu1 %v288_v0 }
 0x159   :  { %v228_v2 = vpop.f32.mrb[5].mxu0  ;;  %1023 = vmatpush3.bf16.msra.mxu1 %v288_v0 }
 0x15a   :  { %v289_v3 = vpack.c.bf16 %v1004_v1, %v228_v2 }
 0x15c   :  { %v1007_v4 = vpop.f32.mrb[6].mxu0  ;;  %1024 = vmatprep.subr.bf16.mxu1 %v289_v3 }
 0x15d   :  { %v238_v5 = vpop.f32.mrb[7].mxu0  ;;  %1025 = vmatpush3.bf16.msra.mxu1 %v289_v3 }
 0x15e   :  { %v290_v6 = vpack.c.bf16 %v1007_v4, %v238_v5 }
 0x160   :  { %v1010_v7 = vpop.f32.mrb[8].mxu0  ;;  %1026 = vmatprep.subr.bf16.mxu1 %v290_v6 }
 0x161   :  { %v248_v8 = vpop.f32.mrb[9].mxu0  ;;  %1027 = vmatpush3.bf16.msra.mxu1 %v290_v6 }
 0x162   :  { %v291_v9 = vpack.c.bf16 %v1010_v7, %v248_v8 }
 0x164   :  { %v1013_v10 = vpop.f32.mrb[10].mxu0  ;;  %1028 = vmatprep.subr.bf16.mxu1 %v291_v9 }
 0x165   :  { %v258_v11 = vpop.f32.mrb[11].mxu0  ;;  %1029 = vmatpush3.bf16.msra.mxu1 %v291_v9 }
 0x166   :  { %v292_v12 = vpack.c.bf16 %v1013_v10, %v258_v11 }
 0x168   :  { %v1016_v13 = vpop.f32.mrb[12].mxu0  ;;  %1030 = vmatprep.subr.bf16.mxu1 %v292_v12 }
 0x169   :  { %v268_v14 = vpop.f32.mrb[13].mxu0  ;;  %1031 = vmatpush3.bf16.msra.mxu1 %v292_v12 }
 0x16a   :  { %v293_v15 = vpack.c.bf16 %v1016_v13, %v268_v14 }
 0x16c   :  { %v1019_v16 = vpop.f32.mrb[14].mxu0  ;;  %1032 = vmatprep.subr.bf16.mxu1 %v293_v15 }
 0x16d   :  { %v278_v17 = vpop.f32.mrb[15].mxu0  ;;  %1033 = vmatpush3.bf16.msra.mxu1 %v293_v15 }
 0x16e   :  { %v294_v18 = vpack.c.bf16 %v1019_v16, %v278_v17 }
 0x170   :  { %1034 = vmatprep.subr.bf16.mxu1 %v294_v18 }
 0x171   :  { %1035 = vmatpush3.bf16.msra.mxu1 %v294_v18 }
 0x174   :  { %1037 = vmatmul.mubr.bf16.vlgmr.msra.gmra.mrb[0].mxu1 %v1549_v19 }
 0x175   :  { %1040 = vmatprep.mubr.bf16.mxu1 %v1551_v20 }
 0x17c   :  { %1041 = vmatmul.mubr.bf16.gmra.mrb[4].mxu1 %v1555_v21 }
 0x17d   :  { %1044 = vmatprep.mubr.bf16.mxu1 %v1557_v22 }
 0x184   :  { %1045 = vmatmul.mubr.bf16.gmra.mrb[8].mxu1 %v1561_v23 }
 0x185   :  { %1048 = vmatprep.mubr.bf16.mxu1 %v1563_v24 }
 0x18c   :  { %1049 = vmatmul.mubr.bf16.gmra.mrb[12].mxu1 %v1567_v25 }
 0x18d   :  { %1124 = vmatprep.mubr.bf16.mxu1 %v1546_v40 }
 0x247   :  { %v1038_v33 = vpop.f32.mrb[0].mxu1 }
 0x248   :  { %v384_v34 = vpop.f32.mrb[1].mxu1  ;;  %v393_v37 = vadd.f32 %v1038_v33, %v841_v32 }
 0x249   :  { %v385_v35 = vadd.f32 %v841_v32, %v384_v34  ;;  %v1039_v36 = vpop.f32.mrb[2].mxu1 }
 0x24a   :  { %v387_v38 = vpop.f32.mrb[3].mxu1  ;;  %v396_v41 = vadd.f32 %v1039_v36, %v841_v32  ;;  %v449_v43 = vmax.f32 %v393_v37, 0.0 }
 0x24b   :  { %v447_v39 = vmax.f32 %v385_v35, 0.0  ;;  %v388_v40 = vadd.f32 %v841_v32, %v387_v38 }
 0x24c   :  { %v450_v46 = vmax.f32 %v396_v41, 0.0 }
 0x24d   :  { %v448_v42 = vmax.f32 %v388_v40, 0.0  ;;  %1084 = vmatprep.mubr.f32.mxu0 %v447_v39 }
 0x24f   :  { %v1042_v44 = vpop.f32.mrb[4].mxu1  ;;  %1085 = vmatmul.mubr.f32.vlgmr.msra.gmra.mrb[16].mxu0 %v448_v42 }
 0x250   :  { %v400_v45 = vpop.f32.mrb[5].mxu1  ;;  %1087 = vmatprep.mubr.f32.mxu0 %v449_v43  ;;  %v409_v49 = vadd.f32 %v1042_v44, %v841_v32 }
 0x251   :  { %v401_v47 = vadd.f32 %v841_v32, %v400_v45  ;;  %v1043_v48 = vpop.f32.mrb[6].mxu1 }
 0x252   :  { %v403_v50 = vpop.f32.mrb[7].mxu1  ;;  %v412_v53 = vadd.f32 %v1043_v48, %v841_v32  ;;  %v453_v55 = vmax.f32 %v409_v49, 0.0  ;;  %v1433_v48 = vmov 0.0|0.0   ;;  %v1435_v49 = vmov 0.0  }
 0x253   :  { %v451_v51 = vmax.f32 %v401_v47, 0.0  ;;  %v404_v52 = vadd.f32 %v841_v32, %v403_v50  ;;  %1088 = vmatmul.mubr.f32.gmra.mrb[18].mxu0 %v450_v46  ;;  %1239 = vmatprep.subr.bf16.mxu0 %v1433_v48 }
 0x254   :  { %v454_v58 = vmax.f32 %v412_v53, 0.0 }
 0x255   :  { %v452_v54 = vmax.f32 %v404_v52, 0.0  ;;  %1090 = vmatprep.mubr.f32.mxu0 %v451_v51 }
 0x257   :  { %v1046_v56 = vpop.f32.mrb[8].mxu1  ;;  %1091 = vmatmul.mubr.f32.gmra.mrb[20].mxu0 %v452_v54 }
 0x258   :  { %v416_v57 = vpop.f32.mrb[9].mxu1  ;;  %1093 = vmatprep.mubr.f32.mxu0 %v453_v55  ;;  %v425_v61 = vadd.f32 %v1046_v56, %v841_v32 }
 0x259   :  { %v417_v59 = vadd.f32 %v841_v32, %v416_v57  ;;  %v1047_v60 = vpop.f32.mrb[10].mxu1 }
 0x25a   :  { %v419_v62 = vpop.f32.mrb[11].mxu1  ;;  %v428_v1 = vadd.f32 %v1047_v60, %v841_v32  ;;  %v457_v3 = vmax.f32 %v425_v61, 0.0 }
 0x25b   :  { %v455_v63 = vmax.f32 %v417_v59, 0.0  ;;  %v420_v0 = vadd.f32 %v841_v32, %v419_v62  ;;  %1094 = vmatmul.mubr.f32.gmra.mrb[22].mxu0 %v454_v58 }
 0x25c   :  { %v458_v6 = vmax.f32 %v428_v1, 0.0 }
 0x25d   :  { %v456_v2 = vmax.f32 %v420_v0, 0.0  ;;  %1096 = vmatprep.mubr.f32.mxu0 %v455_v63 }
 0x25f   :  { %v1050_v4 = vpop.f32.mrb[12].mxu1  ;;  %1097 = vmatmul.mubr.f32.gmra.mrb[24].mxu0 %v456_v2 }
 0x260   :  { %v432_v5 = vpop.f32.mrb[13].mxu1  ;;  %1099 = vmatprep.mubr.f32.mxu0 %v457_v3  ;;  %v441_v9 = vadd.f32 %v1050_v4, %v841_v32 }
 0x261   :  { %v433_v7 = vadd.f32 %v841_v32, %v432_v5  ;;  %v1051_v8 = vpop.f32.mrb[14].mxu1 }
 0x262   :  { %v435_v10 = vpop.f32.mrb[15].mxu1  ;;  %v444_v13 = vadd.f32 %v1051_v8, %v841_v32  ;;  %v461_v15 = vmax.f32 %v441_v9, 0.0 }
 0x263   :  { %v459_v11 = vmax.f32 %v433_v7, 0.0  ;;  %v436_v12 = vadd.f32 %v841_v32, %v435_v10  ;;  %1100 = vmatmul.mubr.f32.gmra.mrb[26].mxu0 %v458_v6 }
 0x264   :  { %v462_v16 = vmax.f32 %v444_v13, 0.0 }
 0x265   :  { %v460_v14 = vmax.f32 %v436_v12, 0.0  ;;  %1102 = vmatprep.mubr.f32.mxu0 %v459_v11 }
 0x267   :  { %1103 = vmatmul.mubr.f32.gmra.mrb[28].mxu0 %v460_v14 }
 0x268   :  { %1105 = vmatprep.mubr.f32.mxu0 %v461_v15 }
 0x26b   :  { %1106 = vmatmul.mubr.f32.gmra.mrb[30].mxu0 %v462_v16 }
 0x26c   :  { %1172 = vmatprep.mubr.msk.f32.mxu0 %vm1434_vm0, %v1435_v49 }
 0x322   :  { %v1086_v17 = vpop.f32.mrb[16].mxu0 }
 0x323   :  { %v545_v18 = vpop.f32.mrb[17].mxu0 }
 0x324   :  { %v624_v26 = vpack.c.bf16 %v1086_v17, %v545_v18 }
 0x326   :  { %v1089_v27 = vpop.f32.mrb[18].mxu0  ;;  %1108 = vmatprep.subr.bf16.mxu1 %v624_v26 }
 0x327   :  { %v555_v28 = vpop.f32.mrb[19].mxu0  ;;  %1109 = vmatpush3.bf16.msra.mxu1 %v624_v26 }
 0x328   :  { %v625_v29 = vpack.c.bf16 %v1089_v27, %v555_v28 }
 0x32a   :  { %v1092_v30 = vpop.f32.mrb[20].mxu0  ;;  %1110 = vmatprep.subr.bf16.mxu1 %v625_v29 }
 0x32b   :  { %v565_v31 = vpop.f32.mrb[21].mxu0  ;;  %1111 = vmatpush3.bf16.msra.mxu1 %v625_v29 }
 0x32c   :  { %v626_v32 = vpack.c.bf16 %v1092_v30, %v565_v31 }
 0x32e   :  { %v1095_v33 = vpop.f32.mrb[22].mxu0  ;;  %1112 = vmatprep.subr.bf16.mxu1 %v626_v32 }
 0x32f   :  { %v575_v34 = vpop.f32.mrb[23].mxu0  ;;  %1113 = vmatpush3.bf16.msra.mxu1 %v626_v32 }
 0x330   :  { %v627_v35 = vpack.c.bf16 %v1095_v33, %v575_v34 }
 0x332   :  { %v1098_v36 = vpop.f32.mrb[24].mxu0  ;;  %1114 = vmatprep.subr.bf16.mxu1 %v627_v35 }
 0x333   :  { %v585_v37 = vpop.f32.mrb[25].mxu0  ;;  %1115 = vmatpush3.bf16.msra.mxu1 %v627_v35 }
 0x334   :  { %v628_v38 = vpack.c.bf16 %v1098_v36, %v585_v37 }
 0x336   :  { %v1101_v39 = vpop.f32.mrb[26].mxu0  ;;  %1116 = vmatprep.subr.bf16.mxu1 %v628_v38 }
 0x337   :  { %v595_v40 = vpop.f32.mrb[27].mxu0  ;;  %1117 = vmatpush3.bf16.msra.mxu1 %v628_v38 }
 0x338   :  { %v629_v41 = vpack.c.bf16 %v1101_v39, %v595_v40 }
 0x33a   :  { %v1104_v42 = vpop.f32.mrb[28].mxu0  ;;  %1118 = vmatprep.subr.bf16.mxu1 %v629_v41 }
 0x33b   :  { %v605_v43 = vpop.f32.mrb[29].mxu0  ;;  %1119 = vmatpush3.bf16.msra.mxu1 %v629_v41 }
 0x33c   :  { %v630_v44 = vpack.c.bf16 %v1104_v42, %v605_v43  ;;  %v752_v43 = vld [vmem:[#allocation7] sm:$0xff] }
 0x33e   :  { %v1107_v45 = vpop.f32.mrb[30].mxu0  ;;  %1120 = vmatprep.subr.bf16.mxu1 %v630_v44 }
 0x33f   :  { %v615_v46 = vpop.f32.mrb[31].mxu0  ;;  %1121 = vmatpush3.bf16.msra.mxu1 %v630_v44 }
 0x340   :  { %v631_v47 = vpack.c.bf16 %v1107_v45, %v615_v46 }
 0x342   :  { %1122 = vmatprep.subr.bf16.mxu1 %v631_v47 }
 0x343   :  { %1123 = vmatpush3.bf16.msra.mxu1 %v631_v47 }
 0x346   :  { %1125 = vmatmul.mubr.bf16.vlgmr.msra.gmra.mrb[16].mxu1 %v1549_v19  ;;  %v850_v19 = vld [vmem:[%s1610_s6] ss:$0 sm:$0xff]  ;;  %s1436_s6 = smov [#allocation11]  }
 0x347   :  { %1128 = vmatprep.mubr.bf16.mxu1 %v1551_v20  ;;  %s830_s15 = sshll.u32 %s1436_s6, 4  ;;  %s831_s15 = int_to_ptr.vmem [resolvable:$true] %s830_s15 }
 0x348   :  { %s1394_s16 = scalar_lea.vmem %s831_s15, 128  ;;  %p1399_p13 = scmp.lt.s32.totalorder %s831_s15, %s831_s15 }
 0x349   :  { %p1395_p12 = scmp.ne.s32.totalorder %s831_s15, %s1394_s16  ;;  %p1400_p0 = scmp.lt.s32.totalorder %s1394_s16, %s1394_s16 }
 0x34b   :  { %p1401_p1 = por %p1400_p0, %p1399_p13 }
 0x34d   :  { %p1402_p2 = pnand %p1401_p1, %p1395_p12 }
 0x34e   :  { %1129 = vmatmul.mubr.bf16.gmra.mrb[20].mxu1 %v1555_v21 }
 0x34f   :  { %1132 = vmatprep.mubr.bf16.mxu1 %v1557_v22 }
 0x356   :  { %1133 = vmatmul.mubr.bf16.gmra.mrb[24].mxu1 %v1561_v23 }
 0x357   :  { %1136 = vmatprep.mubr.bf16.mxu1 %v1563_v24 }
 0x35e   :  { %1137 = vmatmul.mubr.bf16.gmra.mrb[28].mxu1 %v1567_v25 }
 0x419   :  { %v1126_v20 = vpop.f32.mrb[16].mxu1 }
 0x41a   :  { %v682_v21 = vadd.f32 %v1126_v20, %v850_v19  ;;  %v673_v50 = vpop.f32.mrb[17].mxu1 }
 0x41b   :  { %v674_v22 = vadd.f32 %v850_v19, %v673_v50  ;;  %v1127_v51 = vpop.f32.mrb[18].mxu1 }
 0x41c   :  { %v685_v23 = vadd.f32 %v1127_v51, %v850_v19  ;;  %v676_v52 = vpop.f32.mrb[19].mxu1  ;;  %v738_v53 = vmax.f32 %v682_v21, 0.0 }
 0x41d   :  { %v677_v24 = vadd.f32 %v850_v19, %v676_v52  ;;  %v736_v54 = vmax.f32 %v674_v22, 0.0 }
 0x41e   :  { %v739_v25 = vmax.f32 %v685_v23, 0.0 }
 0x41f   :  { %v737_v55 = vmax.f32 %v677_v24, 0.0 }
 0x420   :  { %v1243_v56 = vpack.c.bf16 %v739_v25, %v738_v53 }
 0x421   :  { %v1240_v57 = vpack.c.bf16 %v737_v55, %v736_v54  ;;  %v1130_v58 = vpop.f32.mrb[20].mxu1 }
 0x422   :  { %v698_v59 = vadd.f32 %v1130_v58, %v850_v19  ;;  %v689_v60 = vpop.f32.mrb[21].mxu1 }
 0x423   :  { %v690_v61 = vadd.f32 %v850_v19, %v689_v60  ;;  %v1131_v62 = vpop.f32.mrb[22].mxu1  ;;  %1241 = vmatpush3.bf16.msra.mxu0 %v1240_v57 }
 0x424   :  { %v701_v63 = vadd.f32 %v1131_v62, %v850_v19  ;;  %v692_v0 = vpop.f32.mrb[23].mxu1  ;;  %1242 = vmatprep.subr.bf16.mxu0 %v1433_v48  ;;  %v742_v2 = vmax.f32 %v698_v59, 0.0 }
 0x425   :  { %v693_v1 = vadd.f32 %v850_v19, %v692_v0  ;;  %v740_v4 = vmax.f32 %v690_v61, 0.0 }
 0x426   :  { %v743_v3 = vmax.f32 %v701_v63, 0.0 }
 0x427   :  { %v741_v5 = vmax.f32 %v693_v1, 0.0  ;;  %1244 = vmatpush3.bf16.msra.mxu0 %v1243_v56 }
 0x428   :  { %v1249_v6 = vpack.c.bf16 %v743_v3, %v742_v2  ;;  %1245 = vmatprep.subr.bf16.mxu0 %v1433_v48 }
 0x429   :  { %v1246_v7 = vpack.c.bf16 %v741_v5, %v740_v4  ;;  %v1134_v8 = vpop.f32.mrb[24].mxu1 }
 0x42a   :  { %v714_v9 = vadd.f32 %v1134_v8, %v850_v19  ;;  %v705_v10 = vpop.f32.mrb[25].mxu1 }
 0x42b   :  { %v706_v11 = vadd.f32 %v850_v19, %v705_v10  ;;  %v1135_v12 = vpop.f32.mrb[26].mxu1  ;;  %1247 = vmatpush3.bf16.msra.mxu0 %v1246_v7 }
 0x42c   :  { %v717_v13 = vadd.f32 %v1135_v12, %v850_v19  ;;  %v708_v14 = vpop.f32.mrb[27].mxu1  ;;  %1248 = vmatprep.subr.bf16.mxu0 %v1433_v48  ;;  %v746_v16 = vmax.f32 %v714_v9, 0.0 }
 0x42d   :  { %v709_v15 = vadd.f32 %v850_v19, %v708_v14  ;;  %v744_v18 = vmax.f32 %v706_v11, 0.0 }
 0x42e   :  { %v747_v17 = vmax.f32 %v717_v13, 0.0 }
 0x42f   :  { %v745_v26 = vmax.f32 %v709_v15, 0.0  ;;  %1250 = vmatpush3.bf16.msra.mxu0 %v1249_v6 }
 0x430   :  { %v1255_v27 = vpack.c.bf16 %v747_v17, %v746_v16  ;;  %1251 = vmatprep.subr.bf16.mxu0 %v1433_v48 }
 0x431   :  { %v1252_v28 = vpack.c.bf16 %v745_v26, %v744_v18  ;;  %v1138_v29 = vpop.f32.mrb[28].mxu1 }
 0x432   :  { %v730_v30 = vadd.f32 %v1138_v29, %v850_v19  ;;  %v721_v31 = vpop.f32.mrb[29].mxu1 }
 0x433   :  { %v722_v32 = vadd.f32 %v850_v19, %v721_v31  ;;  %v1139_v33 = vpop.f32.mrb[30].mxu1  ;;  %1253 = vmatpush3.bf16.msra.mxu0 %v1252_v28 }
 0x434   :  { %v733_v34 = vadd.f32 %v1139_v33, %v850_v19  ;;  %v724_v35 = vpop.f32.mrb[31].mxu1  ;;  %1254 = vmatprep.subr.bf16.mxu0 %v1433_v48  ;;  %v750_v37 = vmax.f32 %v730_v30, 0.0 }
 0x435   :  { %v725_v36 = vadd.f32 %v850_v19, %v724_v35  ;;  %v748_v39 = vmax.f32 %v722_v32, 0.0 }
 0x436   :  { %v751_v38 = vmax.f32 %v733_v34, 0.0 }
 0x437   :  { %v749_v40 = vmax.f32 %v725_v36, 0.0  ;;  %1256 = vmatpush3.bf16.msra.mxu0 %v1255_v27 }
 0x438   :  { %v1261_v41 = vpack.c.bf16 %v751_v38, %v750_v37  ;;  %1257 = vmatprep.subr.bf16.mxu0 %v1433_v48 }
 0x439   :  { %v1258_v42 = vpack.c.bf16 %v749_v40, %v748_v39 }
 0x43b   :  { %1259 = vmatpush3.bf16.msra.mxu0 %v1258_v42 }
 0x43c   :  { %1260 = vmatprep.subr.bf16.mxu0 %v1433_v48 }
 0x43f   :  { %1262 = vmatpush3.bf16.msra.mxu0 %v1261_v41 }
 0x442   :  { %1173 = vmatmul.mubr.f32.vlgmr.msra.gmra.mrb[32].mxu0 %v752_v43 }
 0x515   :  { %v819_v44 = vpop.f32.mrb[32].mxu0 }
 0x516   :  { %823 = vst [vmem:[#allocation11] sm:$0xff] %v819_v44  ;;  %v1174_v45 = vpop.f32.mrb[33].mxu0 }
 0x517   :  { %1405 = shalt.err (!%p1402_p2)
}
 0x518   :  { %s1406_s20 = scalar_lea.hbm %s1611_s7, 128 }
 0x519   :  { %p1407_p3 = scmp.ne.s32.totalorder %s1611_s7, %s1406_s20  ;;  %p1410_p4 = scmp.lt.u32.totalorder %s1406_s20, %s1611_s7 }
 0x51b   :  { %p1412_p5 = pnand %p1410_p4, %p1407_p3 }
 0x51d   :  { %1415 = shalt.err (!%p1412_p5)
}
 0x51e   :  { %833 = dma.vmem_to_hbm [thread:$0]  %s831_s15, 128, %s1611_s7, [#allocation4]  }
 0x51f   :  { %1422 = dma.done.wait [#allocation4], 128  }
 0x520   :  { %1423 = vsyncadd [#allocation4], 4294967168 }
 0x521   :  { %837 = vsyncpa [#allocation3], 1 }
 0x522   :  { %838 = vsyncpa [#allocation6], 1 }
 0x523   :  { %839 = vsyncpa [#allocation9], 1 }
 0x524   :  { %840 = vsyncpa [#allocation4], 1 }

</bundles_post_ra>
